<compile_context>
chip_gen: v5e
topology: v5e:2x2
jax: 0.10.0
libtpu: 0.0.40
codegen_flags: <defaults>
</compile_context>

<pallas_src>
import functools
import math

import jax
import jax.numpy as jnp
import numpy as np
from jax.experimental import pallas as pl
from jax.experimental.pallas import tpu as pltpu


# ---------------------------------------------------------------------------
# Pallas kernel: one (batch element, residual layer) per grid step.
# ---------------------------------------------------------------------------
def denoiser_kernel(mel_ref, cond_ref, dproj_ref, zbias_ref,
                    w_in_ref, b_in_ref,
                    wc_ref, wconv_ref, bconv_ref, wout_ref, bout_ref,
                    w_skip_ref, b_skip_ref, w_outp_ref, b_outp_ref,
                    out_ref, x_scr, skip_scr,
                    *, n_layers, t_valid):
    f32 = jnp.float32
    bf16 = jnp.bfloat16
    l = pl.program_id(1)
    C, Tp = x_scr.shape

    def mm(a, b):
        # single-pass bf16 MXU matmul, f32 accumulation
        return jnp.dot(a, b, preferred_element_type=f32)

    # ---- first layer of this batch element: input projection + accumulator init
    @pl.when(l == 0)
    def _():
        x0 = mm(w_in_ref[...], mel_ref[0]) + b_in_ref[...]          # [C, Tp]
        x_scr[...] = jnp.maximum(x0, 0.0)   # ReLU (applied twice in torch; idempotent)
        skip_scr[...] = jnp.zeros_like(skip_scr)

    # ---- residual block l ----------------------------------------------------
    x = x_scr[...]                                                  # [C, Tp] f32
    dproj = dproj_ref[0, 0]                                         # [C, 1]  wd[l] @ mlp(step_emb)
    zbias = zbias_ref[0, 0]                                         # [C, 1]  bc[l] + ws[l] @ spk

    cproj = mm(wc_ref[0], cond_ref[0])                              # [C, Tp]
    residual = x + dproj
    z = residual + cproj + zbias                                    # [C, Tp]

    # zero the padded time columns so the k=3 conv sees true zero padding
    col = jax.lax.broadcasted_iota(jnp.int32, (1, Tp), 1)
    z = jnp.where(col < t_valid, z, 0.0)

    # k=3 / pad=1 conv as ONE fused-tap matmul: z3 = [z(t-1); z(t); z(t+1)] -> [3C, Tp]
    z_prev = jnp.where(col == 0, 0.0, pltpu.roll(z, shift=1, axis=1))            # col t = z[:, t-1]
    z_next = jnp.where(col == t_valid - 1, 0.0, pltpu.roll(z, shift=Tp - 1, axis=1))  # col t = z[:, t+1]
    z3 = jnp.concatenate([z_prev, z, z_next], axis=0).astype(bf16)  # [3C, Tp]

    a = mm(wconv_ref[0], z3) + bconv_ref[0]                         # [2C, Tp]
    gate, filt = a[:C], a[C:]
    y = jax.nn.sigmoid(gate) * jnp.tanh(filt)                       # [C, Tp]

    o = mm(wout_ref[0], y.astype(bf16)) + bout_ref[0]               # [2C, Tp]
    res, sk = o[:C], o[C:]

    x_scr[...] = (res + residual) * (1.0 / math.sqrt(2.0))          # next layer input
    skip_scr[...] = skip_scr[...] + sk

    # ---- last layer of this batch element: skip + output projections ---------
    @pl.when(l == n_layers - 1)
    def _():
        s = skip_scr[...] * (1.0 / math.sqrt(n_layers))
        s = jnp.maximum(mm(w_skip_ref[...], s.astype(bf16)) + b_skip_ref[...], 0.0)
        out_ref[0] = (mm(w_outp_ref[...], s.astype(bf16)) + b_outp_ref[...]).astype(out_ref.dtype)


# ---------------------------------------------------------------------------
# Wrapper: glue (step embedding, tiny MLP, rank-1 projections, padding, bf16
# weight casts) + pallas_call over grid (batch, layer).
# ---------------------------------------------------------------------------
@jax.jit
def denoiser_pallas(params, mel, diffusion_step, conditioner, speaker_emb):
    # mel: [B, 1, M, T], diffusion_step: [B], conditioner: [B, E, T], speaker_emb: [B, E]
    B, _, M, T = mel.shape
    C = params['w_in'].shape[0]
    E = conditioner.shape[1]
    L = params['wd'].shape[0]
    Tp = ((T + 127) // 128) * 128          # lane-dense time extent
    HI = jax.lax.Precision.HIGHEST
    f32, bf16 = jnp.float32, jnp.bfloat16

    # --- glue: sinusoidal diffusion-step embedding + tiny MLP (Mish) ---
    half = C // 2
    freqs = jnp.exp(jnp.arange(half, dtype=f32) * -(math.log(10000.0) / (half - 1)))
    e = diffusion_step.astype(f32)[:, None] * freqs[None, :]
    demb = jnp.concatenate([jnp.sin(e), jnp.cos(e)], axis=-1)                 # [B, C]
    h = jnp.einsum('oc,bc->bo', params['w1'], demb, precision=HI)
    h = h * jnp.tanh(jax.nn.softplus(h))                                      # Mish (stable)
    demb = jnp.einsum('oc,bc->bo', params['w2'], h, precision=HI)             # [B, C]

    # --- glue: per-layer rank-1 projections (hoisted out of the kernel) ---
    dproj = jnp.einsum('lod,bd->blo', params['wd'], demb, precision=HI)[..., None]   # [B,L,C,1]
    zbias = (jnp.einsum('loe,be->blo', params['ws'], speaker_emb, precision=HI)
             + params['bc'][None, :, :, 0])[..., None]                                # [B,L,C,1]

    # --- pad time to a multiple of 128 and cast matmul operands to bf16 ---
    pad = Tp - T
    mel_p = jnp.pad(mel[:, 0], ((0, 0), (0, 0), (0, pad))).astype(bf16)       # [B, M, Tp]
    cond_p = jnp.pad(conditioner, ((0, 0), (0, 0), (0, pad))).astype(bf16)    # [B, E, Tp]

    # conv weight [L, 2C, C, 3] -> fused-tap [L, 2C, 3C] with last index = tap*C + in_ch
    wconv_f = jnp.transpose(params['wconv'], (0, 1, 3, 2)).reshape(L, 2 * C, 3 * C).astype(bf16)

    w_in = params['w_in'].astype(bf16)
    wc = params['wc'].astype(bf16)
    wout = params['wout'].astype(bf16)
    w_skip = params['w_skip'].astype(bf16)
    w_outp = params['w_outp'].astype(bf16)
    b_in, bconv, bout = params['b_in'], params['bconv'], params['bout']
    b_skip, b_outp = params['b_skip'], params['b_outp']

    kernel = functools.partial(denoiser_kernel, n_layers=L, t_valid=T)

    out = pl.pallas_call(
        kernel,
        out_shape=jax.ShapeDtypeStruct((B, M, Tp), f32),
        grid_spec=pltpu.PrefetchScalarGridSpec(
            num_scalar_prefetch=0,
            grid=(B, L),
            in_specs=[
                pl.BlockSpec((1, M, Tp), lambda b, l: (b, 0, 0)),          # mel
                pl.BlockSpec((1, E, Tp), lambda b, l: (b, 0, 0)),          # conditioner
                pl.BlockSpec((1, 1, C, 1), lambda b, l: (b, l, 0, 0)),     # dproj column
                pl.BlockSpec((1, 1, C, 1), lambda b, l: (b, l, 0, 0)),     # zbias column
                pl.BlockSpec((C, M), lambda b, l: (0, 0)),                 # w_in
                pl.BlockSpec((C, 1), lambda b, l: (0, 0)),                 # b_in
                pl.BlockSpec((1, C, E), lambda b, l: (l, 0, 0)),           # wc[l]
                pl.BlockSpec((1, 2 * C, 3 * C), lambda b, l: (l, 0, 0)),   # wconv[l] (fused taps)
                pl.BlockSpec((1, 2 * C, 1), lambda b, l: (l, 0, 0)),       # bconv[l]
                pl.BlockSpec((1, 2 * C, C), lambda b, l: (l, 0, 0)),       # wout[l]
                pl.BlockSpec((1, 2 * C, 1), lambda b, l: (l, 0, 0)),       # bout[l]
                pl.BlockSpec((C, C), lambda b, l: (0, 0)),                 # w_skip
                pl.BlockSpec((C, 1), lambda b, l: (0, 0)),                 # b_skip
                pl.BlockSpec((M, C), lambda b, l: (0, 0)),                 # w_outp
                pl.BlockSpec((M, 1), lambda b, l: (0, 0)),                 # b_outp
            ],
            out_specs=pl.BlockSpec((1, M, Tp), lambda b, l: (b, 0, 0)),
            scratch_shapes=[pltpu.VMEM((C, Tp), f32),    # residual stream x
                            pltpu.VMEM((C, Tp), f32)],   # skip accumulator
        ),
        compiler_params=pltpu.CompilerParams(
            dimension_semantics=("parallel", "arbitrary"),
            vmem_limit_bytes=32 * 1024 * 1024,
        ),
    )(mel_p, cond_p, dproj, zbias,
      w_in, b_in, wc, wconv_f, bconv, wout, bout,
      w_skip, b_skip, w_outp, b_outp)

    return out[:, None, :, :T]                                               # [B, 1, M, T]


# ---------------------------------------------------------------------------
# Pure-JAX reference (mirrors the PyTorch module).  matmul_dtype=f32 -> ground
# truth; matmul_dtype=bf16 -> same arithmetic as the kernel's MXU path.
# ---------------------------------------------------------------------------
def denoiser_ref(params, mel, diffusion_step, conditioner, speaker_emb,
                 matmul_dtype=jnp.float32):
    HI = jax.lax.Precision.HIGHEST
    f32 = jnp.float32
    C = params['w_in'].shape[0]
    L = params['wd'].shape[0]

    def c(a):
        return a.astype(matmul_dtype)

    x = mel[:, 0]
    x = jnp.maximum(jnp.einsum('cm,bmt->bct', c(params['w_in']), c(x), precision=HI,
                               preferred_element_type=f32) + params['b_in'][None], 0.0)

    half = C // 2
    freqs = jnp.exp(jnp.arange(half, dtype=f32) * -(math.log(10000.0) / (half - 1)))
    e = diffusion_step.astype(f32)[:, None] * freqs[None, :]
    demb = jnp.concatenate([jnp.sin(e), jnp.cos(e)], axis=-1)                 # [B, C]
    h = jnp.einsum('oc,bc->bo', params['w1'], demb, precision=HI)
    h = h * jnp.tanh(jax.nn.softplus(h))                                      # Mish
    demb = jnp.einsum('oc,bc->bo', params['w2'], h, precision=HI)             # [B, C]

    skip_sum = 0.0
    for l in range(L):
        dproj = jnp.einsum('oc,bc->bo', params['wd'][l], demb, precision=HI)[:, :, None]
        cproj = jnp.einsum('oe,bet->bot', c(params['wc'][l]), c(conditioner), precision=HI,
                           preferred_element_type=f32) + params['bc'][l][None]
        sproj = jnp.einsum('oe,be->bo', params['ws'][l], speaker_emb, precision=HI)[:, :, None]
        residual = x + dproj
        z = residual + cproj + sproj
        a = jax.lax.conv_general_dilated(c(z), c(params['wconv'][l]), window_strides=(1,),
                                         padding=((1, 1),),
                                         dimension_numbers=('NCH', 'OIH', 'NCH'),
                                         precision=HI,
                                         preferred_element_type=f32) + params['bconv'][l][None]
        gate, filt = a[:, :C], a[:, C:]
        y = jax.nn.sigmoid(gate) * jnp.tanh(filt)
        o = jnp.einsum('oc,bct->bot', c(params['wout'][l]), c(y), precision=HI,
                       preferred_element_type=f32) + params['bout'][l][None]
        res, sk = o[:, :C], o[:, C:]
        x = (res + residual) / math.sqrt(2.0)
        skip_sum = skip_sum + sk

    s = skip_sum / math.sqrt(L)
    s = jnp.maximum(jnp.einsum('oc,bct->bot', c(params['w_skip']), c(s), precision=HI,
                               preferred_element_type=f32) + params['b_skip'][None], 0.0)
    out = jnp.einsum('mc,bct->bmt', c(params['w_outp']), c(s), precision=HI,
                     preferred_element_type=f32) + params['b_outp'][None]
    return out[:, None, :, :]


# ---------------------------------------------------------------------------
# Deterministic synthetic parameter init (shapes per Denoiser.__init__).
# ---------------------------------------------------------------------------
def init_params(key, M, C, E, L):
    ks = jax.random.split(key, 16)

    def w(k, shape, fan_in):
        return (jax.random.normal(k, shape, jnp.float32) / np.sqrt(fan_in)).astype(jnp.float32)

    p = {}
    p['w_in'] = w(ks[0], (C, M), M)                    # input_projection Conv1d k=1
    p['b_in'] = 0.1 * jax.random.normal(ks[1], (C, 1), jnp.float32)
    p['w1'] = w(ks[2], (4 * C, C), C)                  # mlp Linear (no bias)
    p['w2'] = w(ks[3], (C, 4 * C), 4 * C)
    p['wd'] = w(ks[4], (L, C, C), C)                   # diffusion_projection (no bias)
    p['wc'] = w(ks[5], (L, C, E), E)                   # conditioner_projection Conv1d k=1
    p['bc'] = 0.1 * jax.random.normal(ks[6], (L, C, 1), jnp.float32)
    p['ws'] = w(ks[7], (L, C, E), E)                   # speaker_projection (no bias)
    p['wconv'] = w(ks[8], (L, 2 * C, C, 3), 3 * C)     # conv_layer Conv1d k=3, pad=1
    p['bconv'] = 0.1 * jax.random.normal(ks[9], (L, 2 * C, 1), jnp.float32)
    p['wout'] = w(ks[10], (L, 2 * C, C), C)            # residual output_projection k=1
    p['bout'] = 0.1 * jax.random.normal(ks[11], (L, 2 * C, 1), jnp.float32)
    p['w_skip'] = w(ks[12], (C, C), C)                 # skip_projection Conv1d k=1
    p['b_skip'] = 0.1 * jax.random.normal(ks[13], (C, 1), jnp.float32)
    p['w_outp'] = jnp.zeros((M, C), jnp.float32)       # nn.init.zeros_ (faithful)
    p['b_outp'] = 0.1 * jax.random.normal(ks[14], (M, 1), jnp.float32)
    return p


if __name__ == "__main__":
    B, M, T = 2, 16, 64          # batch, n_mel_channels, time frames
    C, E, L = 32, 32, 3          # residual_channels, encoder_hidden, residual_layers

    key = jax.random.PRNGKey(0)
    k_mel, k_step, k_cond, k_spk, k_par = jax.random.split(key, 5)
    mel = jax.random.normal(k_mel, (B, 1, M, T), jnp.float32)
    diffusion_step = jax.random.randint(k_step, (B,), 0, 100)
    conditioner = jax.random.normal(k_cond, (B, E, T), jnp.float32)
    speaker_emb = jax.random.normal(k_spk, (B, E), jnp.float32)

    params = init_params(k_par, M, C, E, L)

    # Faithful run (output_projection weight is zero-initialized per the module).
    out = jax.block_until_ready(denoiser_pallas(params, mel, diffusion_step, conditioner, speaker_emb))
    assert out.shape == (B, 1, M, T)
    ref = denoiser_ref(params, mel, diffusion_step, conditioner, speaker_emb)
    np.testing.assert_allclose(np.asarray(out), np.asarray(ref), rtol=1e-2, atol=1e-2)

    # Full-stack check with a non-zero output projection.
    params_nz = dict(params)
    params_nz['w_outp'] = (jax.random.normal(jax.random.PRNGKey(7), (M, C), jnp.float32)
                           / np.sqrt(C)).astype(jnp.float32)
    out_nz = jax.block_until_ready(denoiser_pallas(params_nz, mel, diffusion_step, conditioner, speaker_emb))

    # (a) tight check vs. a bf16-matmul reference (same arithmetic as the kernel's MXU path)
    ref_bf16 = denoiser_ref(params_nz, mel, diffusion_step, conditioner, speaker_emb,
                            matmul_dtype=jnp.bfloat16)
    np.testing.assert_allclose(np.asarray(out_nz), np.asarray(ref_bf16), rtol=1e-2, atol=1e-2)

    # (b) looser check vs. the f32 ground truth (bounds the bf16 drift)
    ref_f32 = denoiser_ref(params_nz, mel, diffusion_step, conditioner, speaker_emb)
    np.testing.assert_allclose(np.asarray(out_nz), np.asarray(ref_f32), rtol=1e-1, atol=1e-1)

    print("KERNEL_OK")
</pallas_src>

<mosaic_0001>
module attributes {stable_mosaic.version = 11 : i64} {
  func.func @denoiser_kernel(%arg0: i32, %arg1: i32, %arg2: memref<1x16x128xbf16, #tpu.memory_space<vmem>>, %arg3: memref<1x32x128xbf16, #tpu.memory_space<vmem>>, %arg4: memref<1x1x32x1xf32, #tpu.memory_space<vmem>>, %arg5: memref<1x1x32x1xf32, #tpu.memory_space<vmem>>, %arg6: memref<32x16xbf16, #tpu.memory_space<vmem>>, %arg7: memref<32x1xf32, #tpu.memory_space<vmem>>, %arg8: memref<1x32x32xbf16, #tpu.memory_space<vmem>>, %arg9: memref<1x64x96xbf16, #tpu.memory_space<vmem>>, %arg10: memref<1x64x1xf32, #tpu.memory_space<vmem>>, %arg11: memref<1x64x32xbf16, #tpu.memory_space<vmem>>, %arg12: memref<1x64x1xf32, #tpu.memory_space<vmem>>, %arg13: memref<32x32xbf16, #tpu.memory_space<vmem>>, %arg14: memref<32x1xf32, #tpu.memory_space<vmem>>, %arg15: memref<16x32xbf16, #tpu.memory_space<vmem>>, %arg16: memref<16x1xf32, #tpu.memory_space<vmem>>, %arg17: memref<1x16x128xf32, #tpu.memory_space<vmem>>, %arg18: memref<32x128xf32, #tpu.memory_space<vmem>>, %arg19: memref<32x128xf32, #tpu.memory_space<vmem>>) attributes {dimension_semantics = [#tpu.dimension_semantics<parallel>, #tpu.dimension_semantics<arbitrary>], iteration_bounds = array<i64: 2, 3>, scalar_prefetch = 0 : i64, scratch_operands = 2 : i64, tpu.core_type = #tpu.core_type<tc>, window_params = [{transform_indices = @transform_0, window_bounds = array<i64: 1, 16, 128>}, {transform_indices = @transform_1, window_bounds = array<i64: 1, 32, 128>}, {transform_indices = @transform_2, window_bounds = array<i64: 1, 1, 32, 1>}, {transform_indices = @transform_3, window_bounds = array<i64: 1, 1, 32, 1>}, {pipeline_mode = #tpu.pipeline_mode<synchronous>, transform_indices = @transform_4, window_bounds = array<i64: 32, 16>}, {pipeline_mode = #tpu.pipeline_mode<synchronous>, transform_indices = @transform_5, window_bounds = array<i64: 32, 1>}, {transform_indices = @transform_6, window_bounds = array<i64: 1, 32, 32>}, {transform_indices = @transform_7, window_bounds = array<i64: 1, 64, 96>}, {transform_indices = @transform_8, window_bounds = array<i64: 1, 64, 1>}, {transform_indices = @transform_9, window_bounds = array<i64: 1, 64, 32>}, {transform_indices = @transform_10, window_bounds = array<i64: 1, 64, 1>}, {pipeline_mode = #tpu.pipeline_mode<synchronous>, transform_indices = @transform_11, window_bounds = array<i64: 32, 32>}, {pipeline_mode = #tpu.pipeline_mode<synchronous>, transform_indices = @transform_12, window_bounds = array<i64: 32, 1>}, {pipeline_mode = #tpu.pipeline_mode<synchronous>, transform_indices = @transform_13, window_bounds = array<i64: 16, 32>}, {pipeline_mode = #tpu.pipeline_mode<synchronous>, transform_indices = @transform_14, window_bounds = array<i64: 16, 1>}, {transform_indices = @transform_15, window_bounds = array<i64: 1, 16, 128>}]} {
    %c0_i32 = arith.constant 0 : i32
    %0 = arith.cmpi eq, %arg1, %c0_i32 : i32
    %1 = arith.extui %0 : i1 to i32
    %c0_i32_0 = arith.constant 0 : i32
    %2 = arith.cmpi ne, %1, %c0_i32_0 : i32
    scf.if %2 {
      %c0_43 = arith.constant 0 : index
      %c0_44 = arith.constant 0 : index
      %77 = vector.load %arg6[%c0_43, %c0_44] : memref<32x16xbf16, #tpu.memory_space<vmem>>, vector<32x16xbf16>
      %c0_45 = arith.constant 0 : index
      %c0_46 = arith.constant 0 : index
      %c0_47 = arith.constant 0 : index
      %78 = vector.load %arg2[%c0_45, %c0_46, %c0_47] : memref<1x16x128xbf16, #tpu.memory_space<vmem>>, vector<1x16x128xbf16>
      %79 = vector.shape_cast %78 : vector<1x16x128xbf16> to vector<16x128xbf16>
      %cst_48 = arith.constant dense<0.000000e+00> : vector<32x128xf32>
      %80 = tpu.matmul %77, %79, %cst_48 {dimension_numbers = #tpu.dot_dimension_numbers<[1], [0], [0], [1], [0, 0, 1, 1], [], []>} : vector<32x16xbf16>, vector<16x128xbf16>, vector<32x128xf32> -> vector<32x128xf32>
      %c0_49 = arith.constant 0 : index
      %c0_50 = arith.constant 0 : index
      %81 = vector.load %arg7[%c0_49, %c0_50] : memref<32x1xf32, #tpu.memory_space<vmem>>, vector<32x1xf32>
      %82 = vector.broadcast %81 : vector<32x1xf32> to vector<32x128xf32>
      %83 = arith.addf %80, %82 : vector<32x128xf32>
      %cst_51 = arith.constant 0.000000e+00 : f32
      %84 = vector.broadcast %cst_51 : f32 to vector<32x128xf32>
      %85 = arith.maximumf %83, %84 : vector<32x128xf32>
      %c0_52 = arith.constant 0 : index
      %c0_53 = arith.constant 0 : index
      %86 = vector.load %arg18[%c0_52, %c0_53] : memref<32x128xf32, #tpu.memory_space<vmem>>, vector<32x128xf32>
      tpu.vector_store %arg18[%c0_52, %c0_53], %85 {strides = array<i32>} : memref<32x128xf32, #tpu.memory_space<vmem>>, vector<32x128xf32>,
      %cst_54 = arith.constant 0.000000e+00 : f32
      %87 = vector.broadcast %cst_54 : f32 to vector<32x128xf32>
      %c0_55 = arith.constant 0 : index
      %c0_56 = arith.constant 0 : index
      %88 = vector.load %arg19[%c0_55, %c0_56] : memref<32x128xf32, #tpu.memory_space<vmem>>, vector<32x128xf32>
      tpu.vector_store %arg19[%c0_55, %c0_56], %87 {strides = array<i32>} : memref<32x128xf32, #tpu.memory_space<vmem>>, vector<32x128xf32>,
    } else {
    }
    %c0 = arith.constant 0 : index
    %c0_1 = arith.constant 0 : index
    %3 = vector.load %arg18[%c0, %c0_1] : memref<32x128xf32, #tpu.memory_space<vmem>>, vector<32x128xf32>
    %c0_2 = arith.constant 0 : index
    %c0_3 = arith.constant 0 : index
    %c0_4 = arith.constant 0 : index
    %c0_5 = arith.constant 0 : index
    %4 = vector.load %arg4[%c0_2, %c0_3, %c0_4, %c0_5] : memref<1x1x32x1xf32, #tpu.memory_space<vmem>>, vector<1x1x32x1xf32>
    %5 = vector.shape_cast %4 : vector<1x1x32x1xf32> to vector<32x1xf32>
    %c0_6 = arith.constant 0 : index
    %c0_7 = arith.constant 0 : index
    %c0_8 = arith.constant 0 : index
    %c0_9 = arith.constant 0 : index
    %6 = vector.load %arg5[%c0_6, %c0_7, %c0_8, %c0_9] : memref<1x1x32x1xf32, #tpu.memory_space<vmem>>, vector<1x1x32x1xf32>
    %7 = vector.shape_cast %6 : vector<1x1x32x1xf32> to vector<32x1xf32>
    %c0_10 = arith.constant 0 : index
    %c0_11 = arith.constant 0 : index
    %c0_12 = arith.constant 0 : index
    %8 = vector.load %arg8[%c0_10, %c0_11, %c0_12] : memref<1x32x32xbf16, #tpu.memory_space<vmem>>, vector<1x32x32xbf16>
    %9 = vector.shape_cast %8 : vector<1x32x32xbf16> to vector<32x32xbf16>
    %c0_13 = arith.constant 0 : index
    %c0_14 = arith.constant 0 : index
    %c0_15 = arith.constant 0 : index
    %10 = vector.load %arg3[%c0_13, %c0_14, %c0_15] : memref<1x32x128xbf16, #tpu.memory_space<vmem>>, vector<1x32x128xbf16>
    %11 = vector.shape_cast %10 : vector<1x32x128xbf16> to vector<32x128xbf16>
    %cst = arith.constant dense<0.000000e+00> : vector<32x128xf32>
    %12 = tpu.matmul %9, %11, %cst {dimension_numbers = #tpu.dot_dimension_numbers<[1], [0], [0], [1], [0, 0, 1, 1], [], []>} : vector<32x32xbf16>, vector<32x128xbf16>, vector<32x128xf32> -> vector<32x128xf32>
    %13 = vector.broadcast %5 : vector<32x1xf32> to vector<32x128xf32>
    %14 = arith.addf %3, %13 : vector<32x128xf32>
    %15 = arith.addf %14, %12 : vector<32x128xf32>
    %16 = vector.broadcast %7 : vector<32x1xf32> to vector<32x128xf32>
    %17 = arith.addf %15, %16 : vector<32x128xf32>
    %18 = tpu.iota {dimensions = array<i32: 1>} : vector<1x128xi32>
    %c64_i32 = arith.constant 64 : i32
    %19 = vector.broadcast %c64_i32 : i32 to vector<1x128xi32>
    %20 = arith.cmpi slt, %18, %19 : vector<1x128xi32>
    %cst_16 = arith.constant 0.000000e+00 : f32
    %21 = vector.shape_cast %20 : vector<1x128xi1> to vector<1x128xi1>
    %22 = vector.broadcast %21 : vector<1x128xi1> to vector<32x128xi1>
    %23 = vector.broadcast %cst_16 : f32 to vector<32x128xf32>
    %24 = arith.select %22, %17, %23 : vector<32x128xi1>, vector<32x128xf32>
    %c0_i32_17 = arith.constant 0 : i32
    %25 = vector.broadcast %c0_i32_17 : i32 to vector<1x128xi32>
    %26 = arith.cmpi eq, %18, %25 : vector<1x128xi32>
    %c1_i32 = arith.constant 1 : i32
    %27 = tpu.dynamic_rotate %24 by %c1_i32 dim 1 : vector<32x128xf32>, i32 -> vector<32x128xf32>
    %cst_18 = arith.constant 0.000000e+00 : f32
    %28 = vector.shape_cast %26 : vector<1x128xi1> to vector<1x128xi1>
    %29 = vector.broadcast %28 : vector<1x128xi1> to vector<32x128xi1>
    %30 = vector.broadcast %cst_18 : f32 to vector<32x128xf32>
    %31 = arith.select %29, %30, %27 : vector<32x128xi1>, vector<32x128xf32>
    %c63_i32 = arith.constant 63 : i32
    %32 = vector.broadcast %c63_i32 : i32 to vector<1x128xi32>
    %33 = arith.cmpi eq, %18, %32 : vector<1x128xi32>
    %c127_i32 = arith.constant 127 : i32
    %34 = tpu.dynamic_rotate %24 by %c127_i32 dim 1 : vector<32x128xf32>, i32 -> vector<32x128xf32>
    %cst_19 = arith.constant 0.000000e+00 : f32
    %35 = vector.shape_cast %33 : vector<1x128xi1> to vector<1x128xi1>
    %36 = vector.broadcast %35 : vector<1x128xi1> to vector<32x128xi1>
    %37 = vector.broadcast %cst_19 : f32 to vector<32x128xf32>
    %38 = arith.select %36, %37, %34 : vector<32x128xi1>, vector<32x128xf32>
    %39 = tpu.concatenate %31, %24, %38 in 0 : vector<32x128xf32>, vector<32x128xf32>, vector<32x128xf32> -> vector<96x128xf32>
    %40 = arith.truncf %39 : vector<96x128xf32> to vector<96x128xbf16>
    %c0_20 = arith.constant 0 : index
    %c0_21 = arith.constant 0 : index
    %c0_22 = arith.constant 0 : index
    %41 = vector.load %arg9[%c0_20, %c0_21, %c0_22] : memref<1x64x96xbf16, #tpu.memory_space<vmem>>, vector<1x64x96xbf16>
    %42 = vector.shape_cast %41 : vector<1x64x96xbf16> to vector<64x96xbf16>
    %cst_23 = arith.constant dense<0.000000e+00> : vector<64x128xf32>
    %43 = tpu.matmul %42, %40, %cst_23 {dimension_numbers = #tpu.dot_dimension_numbers<[1], [0], [0], [1], [0, 0, 1, 1], [], []>} : vector<64x96xbf16>, vector<96x128xbf16>, vector<64x128xf32> -> vector<64x128xf32>
    %c0_24 = arith.constant 0 : index
    %c0_25 = arith.constant 0 : index
    %c0_26 = arith.constant 0 : index
    %44 = vector.load %arg10[%c0_24, %c0_25, %c0_26] : memref<1x64x1xf32, #tpu.memory_space<vmem>>, vector<1x64x1xf32>
    %45 = vector.shape_cast %44 : vector<1x64x1xf32> to vector<64x1xf32>
    %46 = vector.broadcast %45 : vector<64x1xf32> to vector<64x128xf32>
    %47 = arith.addf %43, %46 : vector<64x128xf32>
    %48 = vector.extract_strided_slice %47 {offsets = [0, 0], sizes = [32, 128], strides = [1, 1]} : vector<64x128xf32> to vector<32x128xf32>
    %49 = vector.extract_strided_slice %47 {offsets = [32, 0], sizes = [32, 128], strides = [1, 1]} : vector<64x128xf32> to vector<32x128xf32>
    %50 = arith.negf %48 : vector<32x128xf32>
    %51 = math.exp %50 : vector<32x128xf32>
    %cst_27 = arith.constant 1.000000e+00 : f32
    %52 = vector.broadcast %cst_27 : f32 to vector<32x128xf32>
    %53 = arith.addf %52, %51 : vector<32x128xf32>
    %54 = arith.divf %52, %53 : vector<32x128xf32>
    %55 = math.tanh %49 : vector<32x128xf32>
    %56 = arith.mulf %54, %55 : vector<32x128xf32>
    %c0_28 = arith.constant 0 : index
    %c0_29 = arith.constant 0 : index
    %c0_30 = arith.constant 0 : index
    %57 = vector.load %arg11[%c0_28, %c0_29, %c0_30] : memref<1x64x32xbf16, #tpu.memory_space<vmem>>, vector<1x64x32xbf16>
    %58 = vector.shape_cast %57 : vector<1x64x32xbf16> to vector<64x32xbf16>
    %59 = arith.truncf %56 : vector<32x128xf32> to vector<32x128xbf16>
    %cst_31 = arith.constant dense<0.000000e+00> : vector<64x128xf32>
    %60 = tpu.matmul %58, %59, %cst_31 {dimension_numbers = #tpu.dot_dimension_numbers<[1], [0], [0], [1], [0, 0, 1, 1], [], []>} : vector<64x32xbf16>, vector<32x128xbf16>, vector<64x128xf32> -> vector<64x128xf32>
    %c0_32 = arith.constant 0 : index
    %c0_33 = arith.constant 0 : index
    %c0_34 = arith.constant 0 : index
    %61 = vector.load %arg12[%c0_32, %c0_33, %c0_34] : memref<1x64x1xf32, #tpu.memory_space<vmem>>, vector<1x64x1xf32>
    %62 = vector.shape_cast %61 : vector<1x64x1xf32> to vector<64x1xf32>
    %63 = vector.broadcast %62 : vector<64x1xf32> to vector<64x128xf32>
    %64 = arith.addf %60, %63 : vector<64x128xf32>
    %65 = vector.extract_strided_slice %64 {offsets = [0, 0], sizes = [32, 128], strides = [1, 1]} : vector<64x128xf32> to vector<32x128xf32>
    %66 = vector.extract_strided_slice %64 {offsets = [32, 0], sizes = [32, 128], strides = [1, 1]} : vector<64x128xf32> to vector<32x128xf32>
    %67 = arith.addf %65, %14 : vector<32x128xf32>
    %cst_35 = arith.constant 0.707106769 : f32
    %68 = vector.broadcast %cst_35 : f32 to vector<32x128xf32>
    %69 = arith.mulf %67, %68 : vector<32x128xf32>
    %c0_36 = arith.constant 0 : index
    %c0_37 = arith.constant 0 : index
    %70 = vector.load %arg18[%c0_36, %c0_37] : memref<32x128xf32, #tpu.memory_space<vmem>>, vector<32x128xf32>
    tpu.vector_store %arg18[%c0_36, %c0_37], %69 {strides = array<i32>} : memref<32x128xf32, #tpu.memory_space<vmem>>, vector<32x128xf32>,
    %c0_38 = arith.constant 0 : index
    %c0_39 = arith.constant 0 : index
    %71 = vector.load %arg19[%c0_38, %c0_39] : memref<32x128xf32, #tpu.memory_space<vmem>>, vector<32x128xf32>
    %72 = arith.addf %71, %66 : vector<32x128xf32>
    %c0_40 = arith.constant 0 : index
    %c0_41 = arith.constant 0 : index
    %73 = vector.load %arg19[%c0_40, %c0_41] : memref<32x128xf32, #tpu.memory_space<vmem>>, vector<32x128xf32>
    tpu.vector_store %arg19[%c0_40, %c0_41], %72 {strides = array<i32>} : memref<32x128xf32, #tpu.memory_space<vmem>>, vector<32x128xf32>,
    %c2_i32 = arith.constant 2 : i32
    %74 = arith.cmpi eq, %arg1, %c2_i32 : i32
    %75 = arith.extui %74 : i1 to i32
    %c0_i32_42 = arith.constant 0 : i32
    %76 = arith.cmpi ne, %75, %c0_i32_42 : i32
    scf.if %76 {
      %c0_43 = arith.constant 0 : index
      %c0_44 = arith.constant 0 : index
      %77 = vector.load %arg19[%c0_43, %c0_44] : memref<32x128xf32, #tpu.memory_space<vmem>>, vector<32x128xf32>
      %cst_45 = arith.constant 0.577350259 : f32
      %78 = vector.broadcast %cst_45 : f32 to vector<32x128xf32>
      %79 = arith.mulf %77, %78 : vector<32x128xf32>
      %c0_46 = arith.constant 0 : index
      %c0_47 = arith.constant 0 : index
      %80 = vector.load %arg13[%c0_46, %c0_47] : memref<32x32xbf16, #tpu.memory_space<vmem>>, vector<32x32xbf16>
      %81 = arith.truncf %79 : vector<32x128xf32> to vector<32x128xbf16>
      %cst_48 = arith.constant dense<0.000000e+00> : vector<32x128xf32>
      %82 = tpu.matmul %80, %81, %cst_48 {dimension_numbers = #tpu.dot_dimension_numbers<[1], [0], [0], [1], [0, 0, 1, 1], [], []>} : vector<32x32xbf16>, vector<32x128xbf16>, vector<32x128xf32> -> vector<32x128xf32>
      %c0_49 = arith.constant 0 : index
      %c0_50 = arith.constant 0 : index
      %83 = vector.load %arg14[%c0_49, %c0_50] : memref<32x1xf32, #tpu.memory_space<vmem>>, vector<32x1xf32>
      %84 = vector.broadcast %83 : vector<32x1xf32> to vector<32x128xf32>
      %85 = arith.addf %82, %84 : vector<32x128xf32>
      %cst_51 = arith.constant 0.000000e+00 : f32
      %86 = vector.broadcast %cst_51 : f32 to vector<32x128xf32>
      %87 = arith.maximumf %85, %86 : vector<32x128xf32>
      %c0_52 = arith.constant 0 : index
      %c0_53 = arith.constant 0 : index
      %88 = vector.load %arg15[%c0_52, %c0_53] : memref<16x32xbf16, #tpu.memory_space<vmem>>, vector<16x32xbf16>
      %89 = arith.truncf %87 : vector<32x128xf32> to vector<32x128xbf16>
      %cst_54 = arith.constant dense<0.000000e+00> : vector<16x128xf32>
      %90 = tpu.matmul %88, %89, %cst_54 {dimension_numbers = #tpu.dot_dimension_numbers<[1], [0], [0], [1], [0, 0, 1, 1], [], []>} : vector<16x32xbf16>, vector<32x128xbf16>, vector<16x128xf32> -> vector<16x128xf32>
      %c0_55 = arith.constant 0 : index
      %c0_56 = arith.constant 0 : index
      %91 = vector.load %arg16[%c0_55, %c0_56] : memref<16x1xf32, #tpu.memory_space<vmem>>, vector<16x1xf32>
      %92 = vector.broadcast %91 : vector<16x1xf32> to vector<16x128xf32>
      %93 = arith.addf %90, %92 : vector<16x128xf32>
      %c0_57 = arith.constant 0 : index
      %c0_58 = arith.constant 0 : index
      %c0_59 = arith.constant 0 : index
      %94 = vector.load %arg17[%c0_57, %c0_58, %c0_59] : memref<1x16x128xf32, #tpu.memory_space<vmem>>, vector<1x16x128xf32>
      %95 = vector.shape_cast %94 : vector<1x16x128xf32> to vector<16x128xf32>
      %96 = vector.shape_cast %93 : vector<16x128xf32> to vector<1x16x128xf32>
      tpu.vector_store %arg17[%c0_57, %c0_58, %c0_59], %96 {strides = array<i32>} : memref<1x16x128xf32, #tpu.memory_space<vmem>>, vector<1x16x128xf32>,
    } else {
    }
    return
  }
  func.func @transform_0(%arg0: i32, %arg1: i32) -> (i32, i32, i32) {
    %c0_i32 = arith.constant 0 : i32
    %c0_i32_0 = arith.constant 0 : i32
    %c0_i32_1 = arith.constant 0 : i32
    return %arg0, %c0_i32, %c0_i32_0 : i32, i32, i32
  }
  func.func @transform_1(%arg0: i32, %arg1: i32) -> (i32, i32, i32) {
    %c0_i32 = arith.constant 0 : i32
    %c0_i32_0 = arith.constant 0 : i32
    %c0_i32_1 = arith.constant 0 : i32
    return %arg0, %c0_i32, %c0_i32_0 : i32, i32, i32
  }
  func.func @transform_2(%arg0: i32, %arg1: i32) -> (i32, i32, i32, i32) {
    %c0_i32 = arith.constant 0 : i32
    %c0_i32_0 = arith.constant 0 : i32
    %c0_i32_1 = arith.constant 0 : i32
    return %arg0, %arg1, %c0_i32, %c0_i32_0 : i32, i32, i32, i32
  }
  func.func @transform_3(%arg0: i32, %arg1: i32) -> (i32, i32, i32, i32) {
    %c0_i32 = arith.constant 0 : i32
    %c0_i32_0 = arith.constant 0 : i32
    %c0_i32_1 = arith.constant 0 : i32
    return %arg0, %arg1, %c0_i32, %c0_i32_0 : i32, i32, i32, i32
  }
  func.func @transform_4(%arg0: i32, %arg1: i32) -> (i32, i32) {
    %c0_i32 = arith.constant 0 : i32
    %c0_i32_0 = arith.constant 0 : i32
    %c0_i32_1 = arith.constant 0 : i32
    return %c0_i32, %c0_i32_0 : i32, i32
  }
  func.func @transform_5(%arg0: i32, %arg1: i32) -> (i32, i32) {
    %c0_i32 = arith.constant 0 : i32
    %c0_i32_0 = arith.constant 0 : i32
    %c0_i32_1 = arith.constant 0 : i32
    return %c0_i32, %c0_i32_0 : i32, i32
  }
  func.func @transform_6(%arg0: i32, %arg1: i32) -> (i32, i32, i32) {
    %c0_i32 = arith.constant 0 : i32
    %c0_i32_0 = arith.constant 0 : i32
    %c0_i32_1 = arith.constant 0 : i32
    return %arg1, %c0_i32, %c0_i32_0 : i32, i32, i32
  }
  func.func @transform_7(%arg0: i32, %arg1: i32) -> (i32, i32, i32) {
    %c0_i32 = arith.constant 0 : i32
    %c0_i32_0 = arith.constant 0 : i32
    %c0_i32_1 = arith.constant 0 : i32
    return %arg1, %c0_i32, %c0_i32_0 : i32, i32, i32
  }
  func.func @transform_8(%arg0: i32, %arg1: i32) -> (i32, i32, i32) {
    %c0_i32 = arith.constant 0 : i32
    %c0_i32_0 = arith.constant 0 : i32
    %c0_i32_1 = arith.constant 0 : i32
    return %arg1, %c0_i32, %c0_i32_0 : i32, i32, i32
  }
  func.func @transform_9(%arg0: i32, %arg1: i32) -> (i32, i32, i32) {
    %c0_i32 = arith.constant 0 : i32
    %c0_i32_0 = arith.constant 0 : i32
    %c0_i32_1 = arith.constant 0 : i32
    return %arg1, %c0_i32, %c0_i32_0 : i32, i32, i32
  }
  func.func @transform_10(%arg0: i32, %arg1: i32) -> (i32, i32, i32) {
    %c0_i32 = arith.constant 0 : i32
    %c0_i32_0 = arith.constant 0 : i32
    %c0_i32_1 = arith.constant 0 : i32
    return %arg1, %c0_i32, %c0_i32_0 : i32, i32, i32
  }
  func.func @transform_11(%arg0: i32, %arg1: i32) -> (i32, i32) {
    %c0_i32 = arith.constant 0 : i32
    %c0_i32_0 = arith.constant 0 : i32
    %c0_i32_1 = arith.constant 0 : i32
    return %c0_i32, %c0_i32_0 : i32, i32
  }
  func.func @transform_12(%arg0: i32, %arg1: i32) -> (i32, i32) {
    %c0_i32 = arith.constant 0 : i32
    %c0_i32_0 = arith.constant 0 : i32
    %c0_i32_1 = arith.constant 0 : i32
    return %c0_i32, %c0_i32_0 : i32, i32
  }
  func.func @transform_13(%arg0: i32, %arg1: i32) -> (i32, i32) {
    %c0_i32 = arith.constant 0 : i32
    %c0_i32_0 = arith.constant 0 : i32
    %c0_i32_1 = arith.constant 0 : i32
    return %c0_i32, %c0_i32_0 : i32, i32
  }
  func.func @transform_14(%arg0: i32, %arg1: i32) -> (i32, i32) {
    %c0_i32 = arith.constant 0 : i32
    %c0_i32_0 = arith.constant 0 : i32
    %c0_i32_1 = arith.constant 0 : i32
    return %c0_i32, %c0_i32_0 : i32, i32
  }
  func.func @transform_15(%arg0: i32, %arg1: i32) -> (i32, i32, i32) {
    %c0_i32 = arith.constant 0 : i32
    %c0_i32_0 = arith.constant 0 : i32
    %c0_i32_1 = arith.constant 0 : i32
    return %arg0, %c0_i32, %c0_i32_0 : i32, i32, i32
  }
}

</mosaic_0001>

<bundles_post_ra>
// kernel: denoiser_pallas.1
= control target key start
LH: loop header
LB: loop body
LE: loop exit
PB: predicated region body
PF: predicated region fallthrough
CT: control target
= control target key end

     0   :  { %s2005_s18 = smov 0   ;;  %s2007_s19 = smov 0   ;;  %s2287_s0 = inlined_call_operand.vmem [shape: bf16[2,16,128], index: 0, kind: input, shape index: {}]   ;;  %s2288_s1 = inlined_call_operand.vmem [shape: bf16[2,32,128], index: 1, kind: input, shape index: {}]   ;;  %s2289_s2 = inlined_call_operand.vmem [shape: f32[2,3,32,1], index: 2, kind: input, shape index: {}]   ;;  %s2290_s3 = inlined_call_operand.vmem [shape: f32[2,3,32,1], index: 3, kind: input, shape index: {}]   ;;  %s2291_s4 = inlined_call_operand.vmem [shape: bf16[32,16], index: 4, kind: input, shape index: {}]   ;;  %s2292_s5 = inlined_call_operand.vmem [shape: f32[32,1], index: 5, kind: input, shape index: {}]   ;;  %s2293_s6 = inlined_call_operand.vmem [shape: bf16[3,32,32], index: 6, kind: input, shape index: {}]   ;;  %s2294_s7 = inlined_call_operand.vmem [shape: bf16[3,64,96], index: 7, kind: input, shape index: {}]   ;;  %s2295_s8 = inlined_call_operand.vmem [shape: f32[3,64,1], index: 8, kind: input, shape index: {}]   ;;  %s2296_s9 = inlined_call_operand.vmem [shape: bf16[3,64,32], index: 9, kind: input, shape index: {}]   ;;  %s2297_s10 = inlined_call_operand.vmem [shape: f32[3,64,1], index: 10, kind: input, shape index: {}]   ;;  %s2298_s11 = inlined_call_operand.vmem [shape: bf16[32,32], index: 11, kind: input, shape index: {}]   ;;  %s2299_s12 = inlined_call_operand.vmem [shape: f32[32,1], index: 12, kind: input, shape index: {}]   ;;  %s2300_s13 = inlined_call_operand.vmem [shape: bf16[16,32], index: 13, kind: input, shape index: {}]   ;;  %s2301_s14 = inlined_call_operand.vmem [shape: f32[16,1], index: 14, kind: input, shape index: {}]   ;;  %s2302_s15 = inlined_call_operand.vmem [shape: f32[2,16,128], index: 15, kind: output, shape index: {}]  }
   0x1   :  { %2312 = sst [smem:[#allocation10_spill]] %s2287_s0  ;;  %s2009_s20 = smov 0  }
   0x2   :  { %2313 = sst [smem:[#allocation11_spill]] %s2288_s1  ;;  %s2011_s21 = smov 0  }
   0x3   :  { %2314 = sst [smem:[#allocation12_spill]] %s2291_s4  ;;  %s2013_s22 = smov 0  }
   0x4   :  { %2315 = sst [smem:[#allocation13_spill]] %s2292_s5 }
   0x5   :  { %2316 = sst [smem:[#allocation14_spill]] %s2298_s11 }
   0x6   :  { %2317 = sst [smem:[#allocation15_spill]] %s2299_s12 }
   0x7   :  { %2318 = sst [smem:[#allocation16_spill]] %s2300_s13 }
   0x8   :  { %2319 = sst [smem:[#allocation17_spill]] %s2301_s14 }
   0x9 LB: > { %2320 = sst [smem:[#allocation4_spill]] %s1901_s18  ;;  %s34_s23 = sadd.s32 1, %s1909_s20  ;;  %s1917_s22 = sphi %s2013_s22, %s25_s22   ;;  %s1913_s21 = sphi %s2011_s21, %s2346_s21   ;;  %s1909_s20 = sphi %s2009_s20, %s2345_s20   ;;  %s1905_s19 = sphi %s2007_s19, %s2344_s19   ;;  %s1901_s18 = sphi %s2005_s18, %s2343_s18  }
   0xa   : > { %2321 = sst [smem:[#allocation5_spill]] %s1909_s20  ;;  %s37_s24 = sadd.s32 1, %s1913_s21 }
   0xb   : > { %2322 = sst [smem:[#allocation6_spill]] %s1913_s21  ;;  %p35_p0 = scmp.ge.s32.totalorder %s34_s23, 3 }
   0xc   : > { %2323 = sst [smem:[#allocation7_spill]] %s1917_s22  ;;  %p1599_p1 = scmp.ge.s32.totalorder %s1917_s22, 1 }
   0xd   : > { %p541_p2 = scmp.lt.s32.totalorder %s1917_s22, 7  ;;  %s2348_s23 = smov (%p35_p0, %s34_s23), 0 }
   0xe   : > { %2324 = sst [smem:[#allocation8_spill]] %s2348_s23  ;;  %s2350_s24 = smov (!%p35_p0, %s37_s24), %s1913_s21 }
   0xf   : > { %p542_p3 = pnand %p1599_p1, %p541_p2  ;;  %p39_p4 = scmp.ge.s32.totalorder %s2350_s24, 2 }
  0x10   : > { %p637_p5 = scmp.lt.s32.totalorder (!%p542_p3), %s1905_s19, 1  ;;  %p649_p6 = scmp.lt.s32.totalorder (!%p542_p3), %s1901_s18, 2 }
  0x11   : > { %s2352_s24 = smov (%p39_p4, %s2350_s24), 0  ;;  %545 = sbr.rel (%p542_p3) target bundleno = 1159 (0x487), region = 80 }
  0x12   : > { %2325 = sst [smem:[#allocation9_spill]] %s2352_s24 }
  0x13   : > { %s2326_s0 = sld [smem:[#allocation10_spill]] (!%p542_p3) }
  0x14   : > { %s2327_s1 = sld [smem:[#allocation11_spill]] (!%p542_p3) }
  0x16   : > { %s2354_s19 = smov (!%p637_p5, %s1905_s19), 1 }
  0x17   : > { %s650_s25 = scalar_select %p649_p6, %s1901_s18, 2 }
  0x18   : > { %s1741_s26 = sshll.u32 %s2354_s19, 3  ;;  %s1742_s27 = sshll.u32 %s2354_s19, 4 }
  0x19   : > { %s641_s30 = scalar_lea.vmem %s2326_s0, %s1741_s26  ;;  %s1604_s21 = sshll.u32 %s650_s25, 2 }
  0x1a   : > { %s2045_s23 = scalar_lea.vmem %s2327_s1, %s1742_s27  ;;  %s1780_s24 = smul.u32 12, %s2354_s19 }
  0x1b   : > { %s1743_s20 = sshll.u32 %s650_s25, 4  ;;  %s1744_s22 = sshll.u32 %s650_s25, 5 }
  0x1c   : > { %s653_s13 = sadd.s32 %s1780_s24, %s1604_s21  ;;  %s2050_s12 = scalar_lea.vmem %s2293_s6, %s1743_s20 }
  0x1d   : > { %s1605_s5 = sshll.u32 %s653_s13, 3  ;;  %s2055_s26 = scalar_lea.vmem %s2294_s7, %s1744_s22 }
  0x1e   : > { %s2060_s16 = scalar_lea.vmem %s2289_s2, %s1605_s5  ;;  %s2065_s21 = scalar_lea.vmem %s2290_s3, %s1605_s5 }
  0x1f   : > { %s1745_s24 = sshll.u32 %s650_s25, 6  ;;  %s2070_s13 = scalar_lea.vmem %s2296_s9, %s1744_s22 }
  0x20   : > { %s2075_s18 = scalar_lea.vmem %s2295_s8, %s1745_s24  ;;  %s2080_s29 = scalar_lea.vmem %s2297_s10, %s1745_s24 }
  0x21   : > { %s2085_s5 = scalar_lea.vmem %s2302_s15, %s1742_s27  ;;  %s2328_s25 = sld [smem:[#allocation4_spill]] }
  0x27   : > { %p1620_p7 = scmp.ne.s32.totalorder %s2328_s25, 0 }
  0x28   : > { %s2329_s11 = sld [smem:[#allocation12_spill]] (!%p1620_p7) }
  0x29   : > { %699 = sbr.rel (%p1620_p7) target bundleno = 191 (0xbf), region = 84  ;;  %s2330_s1 = sld [smem:[#allocation13_spill]] (!%p1620_p7) }
  0x2e   : > { %v1751_v0 = vld [vmem:[%s641_s30] sm:$0xff]  ;;  %v1750_v2 = vld [vmem:[%s2329_s11 + $0x8] sm:$0xff]  ;;  %v1919_v3 = vmov 0   ;;  %vm746_vm0 = vcmask 130048   ;;  %v1920_v8 = vmov 0.0  }
  0x2f   : > { %v1749_v1 = vld [vmem:[%s2329_s11] sm:$0xff]  ;;  %1828 = vset.pattern.permute.xlu1 %v1919_v3  ;;  %1827 = vset.pattern.permute.xlu0 %v1919_v3  ;;  %v708_v4 = vld [vmem:[%s2330_s1 + $0x10] sm:$0xff]  ;;  %v709_v6 = vld [vmem:[%s2330_s1 + $0x18] sm:$0xff]  ;;  %780 = vst [vmem:[#allocation3] sm:$0xff] %v1920_v8 }
  0x30   : > { %v706_v5 = vld [vmem:[%s2330_s1] sm:$0xff]  ;;  %760 = vmatpush.bf16.msra.mxu0 %v1751_v0  ;;  %1769 = vmatpush.bf16.msra.mxu1 %v1751_v0  ;;  %v707_v7 = vld [vmem:[%s2330_s1 + $0x8] sm:$0xff]  ;;  %781 = vst [vmem:[#allocation3 + $0x18] sm:$0xff] %v1920_v8 }
  0x31   : > { %722 = vperm.xlu1 %1828, %v708_v4   ;;  %712 = vperm.xlu0 %1827, %v706_v5   ;;  %782 = vst [vmem:[#allocation3 + $0x8] sm:$0xff] %v1920_v8 }
  0x32   : > { %783 = vst [vmem:[#allocation3 + $0x10] sm:$0xff] %v1920_v8 }
  0x33   : > { %1633 = vmatmul.msk.bf16.vlgmr.msra.gmra.mxu0 %vm746_vm0, %v1749_v1  ;;  %1634 = vmatmul.msk.bf16.vlgmr.msra.gmra.mxu1 %vm746_vm0, %v1750_v2 }
  0x39   : > { %727 = vperm.xlu1 %1828, %v709_v6   ;;  %717 = vperm.xlu0 %1827, %v707_v7  }
  0xa3   : > { %v723_v9 = vpop.permute.xlu1 %722  ;;  %v713_v10 = vpop.permute.xlu0 %712 }
  0xab   : > { %v728_v17 = vpop.permute.xlu1 %727  ;;  %v718_v18 = vpop.permute.xlu0 %717 }
  0xb0   : > { %v762_v11 = vpop.f32.mrf.mxu0  ;;  %v767_v12 = vpop.f32.mrf.mxu1 }
  0xb1   : > { %v763_v13 = vadd.f32 %v762_v11, %v713_v10  ;;  %v768_v14 = vadd.f32 %v767_v12, %v723_v9 }
  0xb3   : > { %v772_v15 = vmax.f32 %v763_v13, 0.0  ;;  %v774_v16 = vmax.f32 %v768_v14, 0.0 }
  0xb5   : > { %776 = vst [vmem:[#allocation2 + $0x10] sm:$0xff] %v772_v15 }
  0xb6   : > { %778 = vst [vmem:[#allocation2 + $0x18] sm:$0xff] %v774_v16 }
  0xb8   : > { %v764_v19 = vpop.f32.mrf.mxu0  ;;  %v769_v20 = vpop.f32.mrf.mxu1 }
  0xb9   : > { %v765_v21 = vadd.f32 %v764_v19, %v718_v18  ;;  %v770_v22 = vadd.f32 %v769_v20, %v728_v17 }
  0xbb   : > { %v773_v23 = vmax.f32 %v765_v21, 0.0  ;;  %v775_v24 = vmax.f32 %v770_v22, 0.0 }
  0xbd   : > { %777 = vst [vmem:[#allocation2] sm:$0xff] %v773_v23 }
  0xbe   : > { %779 = vst [vmem:[#allocation2 + $0x8] sm:$0xff] %v775_v24 }
  0xbf PF: > { %v1755_v25 = vld [vmem:[%s2045_s23 + $0x8] sm:$0xff]  ;;  %v790_v26 = vld [vmem:[%s2060_s16 + $0x10] sm:$0xff]  ;;  %v788_v27 = vld [vmem:[%s2060_s16] sm:$0xff]  ;;  %v1921_v28 = vmov 0   ;;  %vm826_vm1 = vcmask 261120   ;;  %v904_v45 = vlaneseq  ;;  %vm1025_vm8 = vcmask 785408  }
  0xc0   : > { %1830 = vset.pattern.permute.xlu1 %v1921_v28  ;;  %1829 = vset.pattern.permute.xlu0 %v1921_v28  ;;  %v1754_v29 = vld [vmem:[%s2045_s23] sm:$0xff]  ;;  %v794_v30 = vld [vmem:[%s2065_s21 + $0x10] sm:$0xff]  ;;  %v791_v32 = vld [vmem:[%s2060_s16 + $0x18] sm:$0xff]  ;;  %s1923_s23 = smov 1  }
  0xc1   : > { %839 = vmatpush.bf16.msra.mxu0 %v1755_v25  ;;  %864 = vperm.xlu0 %1829, %v790_v26   ;;  %v1752_v31 = vld [vmem:[%s2050_s12] sm:$0xff]  ;;  %v789_v33 = vld [vmem:[%s2060_s16 + $0x8] sm:$0xff]  ;;  %v795_v34 = vld [vmem:[%s2065_s21 + $0x18] sm:$0xff]  ;;  %v2123_v48 = vand.u32 127, %v904_v45 }
  0xc2   : > { %854 = vperm.xlu1 %1830, %v788_v27   ;;  %1831 = vset.pattern.permute.xlu2 %v1921_v28  ;;  %v792_v35 = vld [vmem:[%s2065_s21] sm:$0xff]  ;;  %v793_v36 = vld [vmem:[%s2065_s21 + $0x8] sm:$0xff]  ;;  %v784_v40 = vld [vmem:[#allocation2 + $0x10] sm:$0xff] }
  0xc3   : > { %892 = vperm.xlu2 %1831, %v794_v30   ;;  %v1753_v37 = vld [vmem:[%s2050_s12 + $0x8] sm:$0xff]  ;;  %vm906_vm2 = vcmp.lt.s32.totalorder %v2123_v48, 64  ;;  %v786_v60 = vld [vmem:[#allocation2 + $0x18] sm:$0xff]  ;;  %s1922_s12 = smov 127   ;;  %v959_v2 = vld [vmem:[%s2075_s18 + $0x10] sm:$0xff]  ;;  %vm1767_vm3 = vcmp.ne.s32.totalorder %v2123_v48, 63 }
  0xc4   : > { %v785_v46 = vld [vmem:[#allocation2] sm:$0xff]  ;;  %v958_v13 = vld [vmem:[%s2075_s18 + $0x8] sm:$0xff]  ;;  %v960_v14 = vld [vmem:[%s2075_s18 + $0x18] sm:$0xff]  ;;  %vm1768_vm6 = vcmp.ne.s32.totalorder %v2123_v48, 0 }
  0xc5   : > { %840 = vmatpush.bf16.msra.mxu0 %v1754_v29  ;;  %v787_v0 = vld [vmem:[#allocation2 + $0x8] sm:$0xff]  ;;  %v961_v15 = vld [vmem:[%s2075_s18 + $0x20] sm:$0xff]  ;;  %v963_v16 = vld [vmem:[%s2075_s18 + $0x30] sm:$0xff] }
  0xc6   : > { %v957_v17 = vld [vmem:[%s2075_s18] sm:$0xff]  ;;  %v1162_v18 = vld [vmem:[%s2080_s29 + $0x8] sm:$0xff]  ;;  %v964_v20 = vld [vmem:[%s2075_s18 + $0x38] sm:$0xff] }
  0xc7   : > { %v962_v19 = vld [vmem:[%s2075_s18 + $0x28] sm:$0xff]  ;;  %v1165_v21 = vld [vmem:[%s2080_s29 + $0x20] sm:$0xff]  ;;  %v1163_v22 = vld [vmem:[%s2080_s29 + $0x10] sm:$0xff] }
  0xc8   : > { %1651 = vmatmul.msk.bf16.vlgmr.msra.gmra.mxu0 %vm826_vm1, %v1752_v31  ;;  %v1161_v23 = vld [vmem:[%s2080_s29] sm:$0xff]  ;;  %v1168_v24 = vld [vmem:[%s2080_s29 + $0x38] sm:$0xff]  ;;  %v1166_v25 = vld [vmem:[%s2080_s29 + $0x28] sm:$0xff] }
  0xc9   : > { %869 = vperm.xlu0 %1829, %v791_v32   ;;  %v1164_v26 = vld [vmem:[%s2080_s29 + $0x18] sm:$0xff]  ;;  %v1167_v27 = vld [vmem:[%s2080_s29 + $0x30] sm:$0xff]  ;;  %vm1671_vm4 = vmpackc.low %vm1767_vm3, %vm1767_vm3 }
  0xca   : > { %859 = vperm.xlu1 %1830, %v789_v33   ;;  %vm1679_vm5 = vmpackc.low %vm906_vm2, %vm906_vm2  ;;  %v1756_v45 = vld [vmem:[%s2055_s26] sm:$0xff]  ;;  %v1759_v48 = vld [vmem:[%s2055_s26 + $0x18] sm:$0xff] }
  0xcb   : > { %897 = vperm.xlu2 %1831, %v795_v34   ;;  %vm1687_vm7 = vmpackc.low %vm1768_vm6, %vm1768_vm6 }
  0xd1   : > { %882 = vperm.xlu0 %1829, %v792_v35  }
  0xd2   : > { %887 = vperm.xlu1 %1830, %v793_v36  }
  0xd8   : > { %1652 = vmatmul.msk.bf16.gmra.mxu0 %vm826_vm1, %v1753_v37 }
 0x11d   : > { %v893_v61 = vpop.permute.xlu2 %892 }
 0x125   : > { %v898_v7 = vpop.permute.xlu2 %897 }
 0x133   : > { %v865_v38 = vpop.permute.xlu0 %864 }
 0x134   : > { %v855_v39 = vpop.permute.xlu1 %854  ;;  %v2135_v63 = vadd.f32 %v865_v38, %v786_v60 }
 0x135   : > { %v2120_v44 = vadd.f32 %v855_v39, %v784_v40 }
 0x13b   : > { %v870_v41 = vpop.permute.xlu0 %869 }
 0x13c   : > { %v860_v42 = vpop.permute.xlu1 %859  ;;  %v2139_v3 = vadd.f32 %v870_v41, %v787_v0 }
 0x13d   : > { %v2125_v49 = vadd.f32 %v860_v42, %v785_v46  ;;  %v1758_v46 = vld [vmem:[%s2055_s26 + $0x10] sm:$0xff] }
 0x143   : > { %v883_v50 = vpop.permute.xlu0 %882 }
 0x144   : > { %v888_v54 = vpop.permute.xlu1 %887 }
 0x145   : > { %v842_v43 = vpop.f32.mrf.mxu0 }
 0x146   : > { %v876_v47 = vadd.f32 %v2120_v44, %v842_v43 }
 0x148   : > { %v900_v52 = vadd.f32 %v883_v50, %v876_v47  ;;  %v1757_v47 = vld [vmem:[%s2055_s26 + $0x8] sm:$0xff]  ;;  %s2337_s26 = sld [smem:[#allocation4_spill]] }
 0x14a   : > { %v909_v56 = vsel %vm906_vm2, %v900_v52, 0.0 }
 0x14d   : > { %v844_v51 = vpop.f32.mrf.mxu0 }
 0x14e   : > { %v877_v53 = vadd.f32 %v2125_v49, %v844_v51  ;;  %p1723_p8 = scmp.ne.s32.totalorder %s2337_s26, 2 }
 0x14f   : > { %s2339_s14 = sld [smem:[#allocation14_spill]] (!%p1723_p8) }
 0x150   : > { %v901_v55 = vadd.f32 %v888_v54, %v877_v53  ;;  %s2340_s25 = sld [smem:[#allocation17_spill]] (!%p1723_p8) }
 0x151   : > { %s2341_s21 = sld [smem:[#allocation16_spill]] (!%p1723_p8) }
 0x152   : > { %v910_v57 = vsel %vm906_vm2, %v901_v55, 0.0  ;;  %v2133_v58 = vpack.c.bf16 %v901_v55, %v900_v52 }
 0x153   : > { %v1837_v59 = vpack.i.bf16 %v910_v57, %v909_v56 }
 0x155   : > { %v847_v62 = vpop.f32.mrf.mxu0  ;;  %1838 = vrot.lane.b32.xlu0 %v1837_v59, %s1922_s12 }
 0x156   : > { %v878_v1 = vadd.f32 %v2135_v63, %v847_v62 }
 0x158   : > { %v902_v5 = vadd.f32 %v893_v61, %v878_v1 }
 0x15a   : > { %v911_v9 = vsel %vm906_vm2, %v902_v5, 0.0 }
 0x15d   : > { %v849_v4 = vpop.f32.mrf.mxu0  ;;  %977 = vperm.xlu0 %1829, %v959_v2  }
 0x15e   : > { %v879_v6 = vadd.f32 %v2139_v3, %v849_v4 }
 0x160   : > { %v903_v8 = vadd.f32 %v898_v7, %v879_v6 }
 0x162   : > { %v912_v10 = vsel %vm906_vm2, %v903_v8, 0.0  ;;  %v1680_v11 = vpack.c.bf16 %v903_v8, %v902_v5 }
 0x163   : > { %v1842_v12 = vpack.i.bf16 %v912_v10, %v911_v9 }
 0x165   : > { %1843 = vrot.lane.b32.xlu1 %v1842_v12, %s1923_s23  ;;  %1833 = vrot.lane.b32.xlu2 %v1842_v12, %s1922_s12 }
 0x166   : > { %972 = vperm.xlu0 %1829, %v958_v13  }
 0x16d   : > { %982 = vperm.xlu1 %1830, %v960_v14   ;;  %1848 = vrot.lane.b32.xlu2 %v1837_v59, %s1923_s23 }
 0x16e   : > { %987 = vperm.xlu0 %1829, %v961_v15  }
 0x175   : > { %997 = vperm.xlu1 %1830, %v963_v16   ;;  %967 = vperm.xlu2 %1831, %v957_v17  }
 0x176   : > { %1176 = vperm.xlu0 %1829, %v1162_v18  }
 0x17d   : > { %992 = vperm.xlu1 %1830, %v962_v19   ;;  %1002 = vperm.xlu2 %1831, %v964_v20  }
 0x17e   : > { %1191 = vperm.xlu0 %1829, %v1165_v21  }
 0x185   : > { %1181 = vperm.xlu1 %1830, %v1163_v22   ;;  %1171 = vperm.xlu2 %1831, %v1161_v23  }
 0x186   : > { %1206 = vperm.xlu0 %1829, %v1168_v24  }
 0x18d   : > { %1196 = vperm.xlu1 %1830, %v1166_v25   ;;  %1186 = vperm.xlu2 %1831, %v1164_v26  }
 0x195   : > { %1201 = vperm.xlu2 %1831, %v1167_v27  }
 0x1bf   : > { %v1834_v28 = vpop.permute.xlu2 %1833 }
 0x1c0   : > { %v1836_v29 = vunpack.i.h.bf16 %v1834_v28  ;;  %v1835_v30 = vunpack.i.l.bf16 %v1834_v28 }
 0x1c2   : > { %v1672_v31 = vpack.c.bf16 %v1836_v29, %v1835_v30 }
 0x1c4   : > { %1673 = vmatpush.bf16.msk.msra.mxu1 %vm1671_vm4, %v1672_v31  ;;  %1770 = vmatpush.bf16.msk.msra.mxu3 %vm1671_vm4, %v1672_v31 }
 0x1c7   : > { %v1839_v32 = vpop.permute.xlu0 %1838  ;;  %v1849_v36 = vpop.permute.xlu2 %1848 }
 0x1c8   : > { %v1841_v33 = vunpack.i.h.bf16 %v1839_v32  ;;  %v1840_v34 = vunpack.i.l.bf16 %v1839_v32  ;;  %v1851_v40 = vunpack.i.h.bf16 %v1849_v36  ;;  %v1850_v41 = vunpack.i.l.bf16 %v1849_v36 }
 0x1ca   : > { %v1677_v35 = vpack.c.bf16 %v1841_v33, %v1840_v34  ;;  %v1693_v43 = vpack.c.bf16 %v1851_v40, %v1850_v41 }
 0x1cc   : > { %1678 = vmatpush.bf16.msk.msra.mxu1 %vm1671_vm4, %v1677_v35  ;;  %1771 = vmatpush.bf16.msk.msra.mxu3 %vm1671_vm4, %v1677_v35 }
 0x1cf   : > { %v978_v50 = vpop.permute.xlu0 %977  ;;  %v968_v52 = vpop.permute.xlu2 %967 }
 0x1d0   : > { %1681 = vmatpush.bf16.msk.msra.mxu1 %vm1679_vm5, %v1680_v11  ;;  %1772 = vmatpush.bf16.msk.msra.mxu3 %vm1679_vm5, %v1680_v11 }
 0x1d4   : > { %1684 = vmatpush.bf16.msk.msra.mxu1 %vm1679_vm5, %v2133_v58  ;;  %1773 = vmatpush.bf16.msk.msra.mxu3 %vm1679_vm5, %v2133_v58 }
 0x1d7   : > { %v1844_v37 = vpop.permute.xlu1 %1843  ;;  %v1003_v29 = vpop.permute.xlu2 %1002 }
 0x1d8   : > { %v1846_v38 = vunpack.i.h.bf16 %v1844_v37  ;;  %v1845_v39 = vunpack.i.l.bf16 %v1844_v37  ;;  %v973_v54 = vpop.permute.xlu0 %972 }
 0x1da   : > { %v1688_v42 = vpack.c.bf16 %v1846_v38, %v1845_v39 }
 0x1dc   : > { %1689 = vmatpush.bf16.msk.msra.mxu1 %vm1687_vm7, %v1688_v42  ;;  %1774 = vmatpush.bf16.msk.msra.mxu3 %vm1687_vm7, %v1688_v42 }
 0x1df   : > { %v983_v5 = vpop.permute.xlu1 %982 }
 0x1e0   : > { %1694 = vmatpush.bf16.msk.msra.mxu1 %vm1687_vm7, %v1693_v43  ;;  %1775 = vmatpush.bf16.msk.msra.mxu3 %vm1687_vm7, %v1693_v43  ;;  %v988_v27 = vpop.permute.xlu0 %987 }
 0x1e3   : > { %1695 = vmatmul.msk.bf16.vlgmr.msra.gmra.mxu1 %vm1025_vm8, %v1756_v45  ;;  %1697 = vmatmul.msk.bf16.vlgmr.msra.gmra.mxu3 %vm1025_vm8, %v1758_v46 }
 0x1e7   : > { %v998_v15 = vpop.permute.xlu1 %997 }
 0x1ef   : > { %v993_v30 = vpop.permute.xlu1 %992 }
 0x1f3   : > { %1696 = vmatmul.msk.bf16.gmra.mxu1 %vm1025_vm8, %v1757_v47  ;;  %1698 = vmatmul.msk.bf16.gmra.mxu3 %vm1025_vm8, %v1759_v48 }
 0x260   : > { %v1047_v51 = vpop.f32.mrf.mxu1 }
 0x261   : > { %v1048_v53 = vadd.f32 %v1047_v51, %v968_v52 }
 0x263   : > { %v1699_v57 = vmul.f32 -1.442695, %v1048_v53 }
 0x266   : > { %v1057_v58 = vpop.f32.mrf.mxu3 }
 0x267   : > { %v1058_v31 = vadd.f32 %v1057_v58, %v988_v27 }
 0x268   : > { %v1049_v55 = vpop.f32.mrf.mxu1 }
 0x269   : > { %v1050_v56 = vadd.f32 %v1049_v55, %v973_v54 }
 0x26b   : > { %v1700_v59 = vmul.f32 -1.442695, %v1050_v56  ;;  %v1285_v56 = vld [vmem:[#allocation3 + $0x10] sm:$0xff] }
 0x26d   : > { %1852 = vpow2.f32 %v1700_v59 }
 0x26e   : > { %1854 = vpow2.f32 %v1699_v57  ;;  %v1059_v2 = vpop.f32.mrf.mxu3 }
 0x26f   : > { %v1060_v34 = vadd.f32 %v1059_v2, %v993_v30 }
 0x270   : > { %v1052_v60 = vpop.f32.mrf.mxu1 }
 0x271   : > { %v1053_v61 = vadd.f32 %v1052_v60, %v978_v50 }
 0x273   : > { %v1853_v62 = vpop.eup %1852  ;;  %v1701_v0 = vmul.f32 -1.442695, %v1053_v61 }
 0x274   : > { %v1855_v1 = vpop.eup %1854  ;;  %v2172_v4 = vadd.f32 1.0, %v1853_v62 }
 0x275   : > { %1856 = vpow2.f32 %v1701_v0  ;;  %v2174_v6 = vadd.f32 1.0, %v1855_v1 }
 0x276   : > { %1858 = vrcp.f32 %v2172_v4  ;;  %v1062_v12 = vpop.f32.mrf.mxu3  ;;  %vm1103_vm12 = vweird.f32 %v2172_v4  ;;  %v1107_v40 = vand.u32 2147483647, %v2172_v4  ;;  %v1109_v48 = vand.u32 2147483648, %v2172_v4 }
 0x277   : > { %1860 = vrcp.f32 %v2174_v6  ;;  %v1063_v28 = vadd.f32 %v1062_v12, %v998_v15  ;;  %vm1088_vm9 = vweird.f32 %v2174_v6  ;;  %v1092_v54 = vand.u32 2147483647, %v2174_v6 }
 0x278   : > { %v1054_v7 = vpop.f32.mrf.mxu1  ;;  %v1094_v55 = vand.u32 2147483648, %v2174_v6  ;;  %v1110_v0 = vor.u32 1.1754944e-38, %v1109_v48  ;;  %vm1108_vm8 = vcmp.eq.f32.partialorder %v1107_v40, 8.507059e+37 }
 0x279   : > { %v1055_v8 = vadd.f32 %v1054_v7, %v983_v5 }
 0x27b   : > { %v1857_v9 = vpop.eup %1856  ;;  %v1702_v10 = vmul.f32 -1.442695, %v1055_v8 }
 0x27c   : > { %v1081_v11 = vadd.f32 1.0, %v1857_v9  ;;  %v2178_v13 = vpop.eup %1858 }
 0x27d   : > { %1862 = vpow2.f32 %v1702_v10  ;;  %v2180_v14 = vpop.eup %1860  ;;  %v1099_v17 = vmul.f32 %v2178_v13, %v2172_v4  ;;  %vm1104_vm13 = vweird.f32 %v2178_v13 }
 0x27e   : > { %1864 = vrcp.f32 %v1081_v11  ;;  %v1084_v20 = vmul.f32 %v2180_v14, %v2174_v6  ;;  %v1064_v25 = vpop.f32.mrf.mxu3  ;;  %vm1089_vm10 = vweird.f32 %v2180_v14  ;;  %v1124_v39 = vand.u32 2147483648, %v1081_v11  ;;  %vm2208_vm2 = vmor %vm1103_vm12, %vm1104_vm13 }
 0x27f   : > { %v1100_v23 = vsub.f32 1.0, %v1099_v17  ;;  %v1065_v35 = vadd.f32 %v1064_v25, %v1003_v29  ;;  %vm1118_vm14 = vweird.f32 %v1081_v11  ;;  %v1122_v41 = vand.u32 2147483647, %v1081_v11  ;;  %vm2216_vm5 = vmor %vm1088_vm9, %vm1089_vm10  ;;  %v1760_v17 = vld [vmem:[%s2070_s13] sm:$0xff]  ;;  %v1177_v29 = vpop.permute.xlu0 %1176 }
 0x280   : > { %v1085_v24 = vsub.f32 1.0, %v1084_v20  ;;  %v1125_v53 = vor.u32 1.1754944e-38, %v1124_v39  ;;  %v1095_v6 = vor.u32 1.1754944e-38, %v1094_v55  ;;  %vm1093_vm9 = vcmp.eq.f32.partialorder %v1092_v54, 8.507059e+37  ;;  %v1763_v20 = vld [vmem:[%s2070_s13 + $0x18] sm:$0xff] }
 0x281   : > { %v1101_v32 = vmul.f32 %v2178_v13, %v1100_v23  ;;  %vm1123_vm3 = vcmp.eq.f32.partialorder %v1122_v41, 8.507059e+37 }
 0x282   : > { %v1086_v36 = vmul.f32 %v2180_v14, %v1085_v24 }
 0x283   : > { %v1863_v16 = vpop.eup %1862  ;;  %v1102_v43 = vadd.f32 %v2178_v13, %v1101_v32 }
 0x284   : > { %v1865_v18 = vpop.eup %1864  ;;  %v1082_v19 = vadd.f32 1.0, %v1863_v16  ;;  %v1087_v47 = vadd.f32 %v2180_v14, %v1086_v36 }
 0x285   : > { %v1114_v21 = vmul.f32 %v1865_v18, %v1081_v11  ;;  %vm1119_vm11 = vweird.f32 %v1865_v18  ;;  %v1106_v59 = vsel %vm2208_vm2, %v2178_v13, %v1102_v43 }
 0x286   : > { %1866 = vrcp.f32 %v1082_v19  ;;  %vm2194_vm15 = vmor %vm1118_vm14, %vm1119_vm11  ;;  %v1139_v46 = vand.u32 2147483648, %v1082_v19  ;;  %v1137_v52 = vand.u32 2147483647, %v1082_v19  ;;  %vm1133_vm4 = vweird.f32 %v1082_v19 }
 0x287   : > { %v1115_v22 = vsub.f32 1.0, %v1114_v21  ;;  %1868 = vtanh.f32 %v1063_v28  ;;  %v1091_v2 = vsel %vm2216_vm5, %v2180_v14, %v1087_v47  ;;  %v1111_v7 = vsel %vm1108_vm8, %v1110_v0, %v1106_v59  ;;  %v1172_v21 = vpop.permute.xlu2 %1171  ;;  %v1192_v40 = vpop.permute.xlu0 %1191  ;;  %v1283_v47 = vld [vmem:[#allocation3 + $0x18] sm:$0xff] }
 0x288   : > { %1870 = vtanh.f32 %v1065_v35  ;;  %v1140_v62 = vor.u32 1.1754944e-38, %v1139_v46  ;;  %vm1138_vm7 = vcmp.eq.f32.partialorder %v1137_v52, 8.507059e+37  ;;  %v1096_v11 = vsel %vm1093_vm9, %v1095_v6, %v1091_v2  ;;  %v1284_v52 = vld [vmem:[#allocation3 + $0x8] sm:$0xff] }
 0x289   : > { %v1116_v26 = vmul.f32 %v1865_v18, %v1115_v22  ;;  %1872 = vtanh.f32 %v1060_v34 }
 0x28a   : > { %1874 = vtanh.f32 %v1058_v31 }
 0x28b   : > { %v1117_v37 = vadd.f32 %v1865_v18, %v1116_v26  ;;  %v1182_v26 = vpop.permute.xlu1 %1181 }
 0x28c   : > { %v1867_v33 = vpop.eup %1866 }
 0x28d   : > { %v1129_v38 = vmul.f32 %v1867_v33, %v1082_v19  ;;  %v1121_v50 = vsel %vm2194_vm15, %v1865_v18, %v1117_v37  ;;  %vm1134_vm0 = vweird.f32 %v1867_v33  ;;  %v1869_v60 = vpop.eup %1868  ;;  %v1761_v18 = vld [vmem:[%s2070_s13 + $0x8] sm:$0xff]  ;;  %v1762_v19 = vld [vmem:[%s2070_s13 + $0x10] sm:$0xff]  ;;  %s2338_s13 = sld [smem:[#allocation15_spill]] (!%p1723_p8) }
 0x28e   : > { %v1126_v61 = vsel %vm1123_vm3, %v1125_v53, %v1121_v50  ;;  %vm1135_vm6 = vmor %vm1133_vm4, %vm1134_vm0  ;;  %v1871_v4 = vpop.eup %1870 }
 0x28f   : > { %v1130_v42 = vsub.f32 1.0, %v1129_v38  ;;  %v1149_v8 = vmul.f32 %v1869_v60, %v1126_v61  ;;  %v1873_v10 = vpop.eup %1872  ;;  %v1187_v36 = vpop.permute.xlu2 %1186 }
 0x290   : > { %v1148_v13 = vmul.f32 %v1873_v10, %v1111_v7  ;;  %v1875_v15 = vpop.eup %1874 }
 0x291   : > { %v1131_v51 = vmul.f32 %v1867_v33, %v1130_v42  ;;  %v1147_v14 = vmul.f32 %v1875_v15, %v1096_v11  ;;  %v1282_v42 = vld [vmem:[#allocation3] sm:$0xff] }
 0x293   : > { %v1132_v57 = vadd.f32 %v1867_v33, %v1131_v51  ;;  %v1159_v16 = vpack.c.bf16 %v1148_v13, %v1147_v14 }
 0x295   : > { %v1136_v1 = vsel %vm1135_vm6, %v1867_v33, %v1132_v57 }
 0x296   : > { %v1141_v5 = vsel %vm1138_vm7, %v1140_v62, %v1136_v1 }
 0x297   : > { %v1150_v9 = vmul.f32 %v1871_v4, %v1141_v5  ;;  %v1202_v50 = vpop.permute.xlu2 %1201 }
 0x299   : > { %v1160_v12 = vpack.c.bf16 %v1150_v9, %v1149_v8 }
 0x29b   : > { %1247 = vmatpush.bf16.msrb.mxu0 %v1160_v12  ;;  %1776 = vmatpush.bf16.msra.mxu2 %v1160_v12 }
 0x29f   : > { %1248 = vmatpush.bf16.msrb.mxu0 %v1159_v16  ;;  %1777 = vmatpush.bf16.msra.mxu2 %v1159_v16 }
 0x2a2   : > { %1719 = vmatmul.msk.bf16.vlgmr.msrb.gmra.mxu0 %vm826_vm1, %v1760_v17  ;;  %1720 = vmatmul.msk.bf16.vlgmr.msra.gmra.mxu2 %vm826_vm1, %v1761_v18 }
 0x2b2   : > { %1721 = vmatmul.msk.bf16.gmra.mxu2 %vm826_vm1, %v1762_v19 }
 0x2c2   : > { %1722 = vmatmul.msk.bf16.gmra.mxu2 %vm826_vm1, %v1763_v20 }
 0x31f   : > { %v1250_v22 = vpop.f32.mrf.mxu0 }
 0x320   : > { %v1251_v23 = vadd.f32 %v1250_v22, %v1172_v21 }
 0x322   : > { %v1270_v24 = vadd.f32 %v1251_v23, %v2120_v44 }
 0x324   : > { %v1274_v25 = vmul.f32 0.70710677, %v1270_v24 }
 0x325   : > { %v1255_v27 = vpop.f32.mrf.mxu2 }
 0x326   : > { %1278 = vst [vmem:[#allocation2 + $0x10] sm:$0xff] %v1274_v25  ;;  %v1256_v28 = vadd.f32 %v1255_v27, %v1182_v26 }
 0x327   : > { %v1252_v30 = vpop.f32.mrf.mxu0 }
 0x328   : > { %v1272_v31 = vadd.f32 %v1256_v28, %v2135_v63  ;;  %v1253_v32 = vadd.f32 %v1252_v30, %v1177_v29  ;;  %v1197_v63 = vpop.permute.xlu1 %1196 }
 0x32a   : > { %v1276_v33 = vmul.f32 0.70710677, %v1272_v31  ;;  %v1271_v34 = vadd.f32 %v1253_v32, %v2125_v49 }
 0x32c   : > { %1280 = vst [vmem:[#allocation2 + $0x18] sm:$0xff] %v1276_v33  ;;  %v1275_v35 = vmul.f32 0.70710677, %v1271_v34 }
 0x32d   : > { %v1257_v37 = vpop.f32.mrf.mxu2 }
 0x32e   : > { %1279 = vst [vmem:[#allocation2] sm:$0xff] %v1275_v35  ;;  %v1258_v38 = vadd.f32 %v1257_v37, %v1187_v36 }
 0x330   : > { %v1273_v44 = vadd.f32 %v1258_v38, %v2139_v3  ;;  %v1207_v3 = vpop.permute.xlu0 %1206 }
 0x332   : > { %v1277_v39 = vmul.f32 0.70710677, %v1273_v44 }
 0x334   : > { %1281 = vst [vmem:[#allocation2 + $0x8] sm:$0xff] %v1277_v39 }
 0x335   : > { %v1260_v41 = vpop.f32.mrf.mxu2 }
 0x336   : > { %v1261_v43 = vadd.f32 %v1260_v41, %v1192_v40 }
 0x338   : > { %v1286_v45 = vadd.f32 %v1282_v42, %v1261_v43 }
 0x33a   : > { %1290 = vst [vmem:[#allocation3] sm:$0xff] %v1286_v45 }
 0x33d   : > { %v1262_v46 = vpop.f32.mrf.mxu2 }
 0x33e   : > { %v1263_v49 = vadd.f32 %v1262_v46, %v1197_v63 }
 0x340   : > { %v1287_v48 = vadd.f32 %v1283_v47, %v1263_v49 }
 0x342   : > { %1291 = vst [vmem:[#allocation3 + $0x18] sm:$0xff] %v1287_v48 }
 0x345   : > { %v1265_v51 = vpop.f32.mrf.mxu2 }
 0x346   : > { %v1266_v53 = vadd.f32 %v1265_v51, %v1202_v50 }
 0x348   : > { %v1288_v54 = vadd.f32 %v1284_v52, %v1266_v53 }
 0x34a   : > { %1292 = vst [vmem:[#allocation3 + $0x8] sm:$0xff] %v1288_v54 }
 0x34d   : > { %v1267_v55 = vpop.f32.mrf.mxu2 }
 0x34e   : > { %v1268_v57 = vadd.f32 %v1267_v55, %v1207_v3  ;;  %1297 = sbr.rel (%p1723_p8) target bundleno = 1159 (0x487), region = 88 }
 0x350   : > { %v1289_v58 = vadd.f32 %v1285_v56, %v1268_v57 }
 0x352   : > { %1293 = vst [vmem:[#allocation3 + $0x10] sm:$0xff] %v1289_v58 }
 0x353   : > { %v1300_v59 = vld [vmem:[#allocation3 + $0x8] sm:$0xff]  ;;  %v1298_v61 = vld [vmem:[#allocation3] sm:$0xff]  ;;  %v1299_v1 = vld [vmem:[#allocation3 + $0x18] sm:$0xff]  ;;  %v1924_v2 = vmov 0  }
 0x354   : > { %v1304_v62 = vmul.f32 0.57735026, %v1300_v59  ;;  %1876 = vset.pattern.permute.xlu0 %v1924_v2  ;;  %1877 = vset.pattern.permute.xlu1 %v1924_v2  ;;  %v1302_v4 = vmul.f32 0.57735026, %v1298_v61  ;;  %v1303_v5 = vmul.f32 0.57735026, %v1299_v1 }
 0x355   : > { %v1314_v6 = vld [vmem:[%s2338_s13 + $0x10] sm:$0xff]  ;;  %1878 = vset.pattern.permute.xlu2 %v1924_v2  ;;  %v1312_v8 = vld [vmem:[%s2338_s13] sm:$0xff]  ;;  %v1765_v10 = vld [vmem:[%s2339_s14 + $0x8] sm:$0xff] }
 0x356   : > { %1328 = vperm.xlu0 %1876, %v1314_v6   ;;  %1318 = vperm.xlu1 %1877, %v1312_v8   ;;  %v1310_v9 = vpack.c.bf16 %v1303_v5, %v1302_v4  ;;  %v1764_v11 = vld [vmem:[%s2339_s14] sm:$0xff]  ;;  %v1315_v12 = vld [vmem:[%s2338_s13 + $0x18] sm:$0xff]  ;;  %v1313_v13 = vld [vmem:[%s2338_s13 + $0x8] sm:$0xff] }
 0x357   : > { %v1379_v15 = vld [vmem:[%s2340_s25] sm:$0xff]  ;;  %v1380_v17 = vld [vmem:[%s2340_s25 + $0x8] sm:$0xff] }
 0x358   : > { %1383 = vperm.xlu2 %1878, %v1379_v15   ;;  %v1766_v34 = vld [vmem:[%s2341_s21] sm:$0xff] }
 0x359   : > { %v1301_v60 = vld [vmem:[#allocation3 + $0x10] sm:$0xff] }
 0x35a   : > { %v1305_v0 = vmul.f32 0.57735026, %v1301_v60 }
 0x35c   : > { %v1311_v7 = vpack.c.bf16 %v1305_v0, %v1304_v62 }
 0x35e   : > { %1778 = vmatpush.bf16.msra.mxu2 %v1311_v7  ;;  %1358 = vmatpush.bf16.msra.mxu0 %v1311_v7 }
 0x35f   : > { %1333 = vperm.xlu0 %1876, %v1315_v12   ;;  %1323 = vperm.xlu1 %1877, %v1313_v13  }
 0x360   : > { %1388 = vperm.xlu2 %1878, %v1380_v17  }
 0x362   : > { %1779 = vmatpush.bf16.msra.mxu2 %v1310_v9  ;;  %1359 = vmatpush.bf16.msra.mxu0 %v1310_v9 }
 0x365   : > { %1733 = vmatmul.msk.bf16.vlgmr.msra.gmra.mxu2 %vm826_vm1, %v1765_v10  ;;  %1732 = vmatmul.msk.bf16.vlgmr.msra.gmra.mxu0 %vm826_vm1, %v1764_v11 }
 0x3b2   : > { %v1384_v35 = vpop.permute.xlu2 %1383 }
 0x3ba   : > { %v1389_v38 = vpop.permute.xlu2 %1388 }
 0x3c8   : > { %v1319_v14 = vpop.permute.xlu1 %1318  ;;  %v1329_v18 = vpop.permute.xlu0 %1328 }
 0x3d1   : > { %v1324_v20 = vpop.permute.xlu1 %1323  ;;  %v1334_v23 = vpop.permute.xlu0 %1333 }
 0x3e2   : > { %v1361_v16 = vpop.f32.mrf.mxu0 }
 0x3e3   : > { %v1362_v25 = vadd.f32 %v1361_v16, %v1319_v14 }
 0x3e5   : > { %v1371_v30 = vmax.f32 %v1362_v25, 0.0 }
 0x3e8   : > { %v1366_v19 = vpop.f32.mrf.mxu2 }
 0x3e9   : > { %v1367_v22 = vadd.f32 %v1366_v19, %v1329_v18 }
 0x3ea   : > { %v1363_v21 = vpop.f32.mrf.mxu0 }
 0x3eb   : > { %v1364_v26 = vadd.f32 %v1363_v21, %v1324_v20  ;;  %v1373_v28 = vmax.f32 %v1367_v22, 0.0 }
 0x3ed   : > { %v1372_v31 = vmax.f32 %v1364_v26, 0.0 }
 0x3ef   : > { %v1377_v33 = vpack.c.bf16 %v1372_v31, %v1371_v30 }
 0x3f0   : > { %v1368_v24 = vpop.f32.mrf.mxu2 }
 0x3f1   : > { %v1369_v27 = vadd.f32 %v1368_v24, %v1334_v23 }
 0x3f3   : > { %v1374_v29 = vmax.f32 %v1369_v27, 0.0 }
 0x3f5   : > { %v1378_v32 = vpack.c.bf16 %v1374_v29, %v1373_v28 }
 0x3f7   : > { %1405 = vmatpush.bf16.msra.mxu1 %v1378_v32 }
 0x3fb   : > { %1406 = vmatpush.bf16.msra.mxu1 %v1377_v33 }
 0x3fe   : > { %1738 = vmatmul.msk.bf16.vlgmr.msra.gmra.mxu1 %vm826_vm1, %v1766_v34 }
 0x47b   : > { %v1408_v36 = vpop.f32.mrf.mxu1 }
 0x47c   : > { %v1409_v37 = vadd.f32 %v1408_v36, %v1384_v35 }
 0x47e   : > { %1413 = vst [vmem:[%s2085_s5] sm:$0xff] %v1409_v37 }
 0x483   : > { %v1410_v44 = vpop.f32.mrf.mxu1 }
 0x484   : > { %v1411_v39 = vadd.f32 %v1410_v44, %v1389_v38 }
 0x486   : > { %1414 = vst [vmem:[%s2085_s5 + $0x8] sm:$0xff] %v1411_v39 }
 0x487 PF: > { %s2342_s18 = sld [smem:[#allocation7_spill]] }
 0x488   : > { %s2344_s19 = sld [smem:[#allocation6_spill]] }
 0x489   : > { %s2345_s20 = sld [smem:[#allocation8_spill]] }
 0x48a   : > { %s2346_s21 = sld [smem:[#allocation9_spill]] }
 0x48d   : > { %s25_s22 = sadd.s32 1, %s2342_s18   ;;  %s2343_s18 = sld [smem:[#allocation5_spill]] }
 0x48e   : > { %p22_p9 = scmp.ge.s32.totalorder %s25_s22, 8  }
 0x490   :  { %24 = sbr.rel (!%p22_p9) target bundleno = 9 (0x9), region = 142 }

</bundles_post_ra>
